<compile_context>
chip_gen: v7x
topology: tpu7x:2x2x1
jax: 0.10.0
libtpu: 0.0.40
codegen_flags: <defaults>
</compile_context>

<pallas_src>
import math
from math import gcd

import jax
import jax.numpy as jnp
from jax.experimental import pallas as pl
from jax.experimental.pallas import tpu as pltpu


def _round_up(x, m):
    return ((x + m - 1) // m) * m


def _cdiv(a, b):
    return -(-a // b)


def _sincos_kernel(pos_ref, e_ref, out_ref):
    # pos_ref: (TM, G+1) f32; last column is a constant 1 (carries the phase).
    # e_ref:   (G+1, W)  f32 VMEM-resident expansion matrix:
    #            e[g, l] = invf[l % D] if l // D == g else 0   (g < G)
    #            e[G, l] = 0 on even lanes, pi/2 on odd lanes  (cos phase)
    # out_ref: (TM, W)   f32 lane-dense output block.
    arg = jnp.dot(
        pos_ref[...],
        e_ref[...],
        preferred_element_type=jnp.float32,
        precision=jax.lax.Precision.HIGHEST,
    )
    out_ref[...] = jnp.sin(arg)


def _sincos_reference(position_ids, output_dim):
    # Pure-JAX port of the torch forward (also the small-shape fast path).
    pos = jnp.asarray(position_ids).reshape(-1).astype(jnp.float32)
    idx = jnp.arange(output_dim // 2, dtype=jnp.float32)
    invf = jnp.power(10000.0, -2.0 * idx / output_dim)
    ang = pos[:, None] * invf[None, :]
    emb = jnp.stack([jnp.sin(ang), jnp.cos(ang)], axis=-1)
    return emb.reshape(-1, output_dim)


def sinusoidal_position_embedding(position_ids, output_dim, *, tile_m=None,
                                  force_pallas=False):
    """position_ids: any shape (flattened, like torch) -> (n, output_dim) f32."""
    D = int(output_dim)
    assert D % 2 == 0, "output_dim must be even"

    pos = jnp.asarray(position_ids).reshape(-1).astype(jnp.float32)
    seq = pos.shape[0]

    # Small-shape fast path: pallas_call fixed cost dominates below ~64K elems.
    if not force_pallas and seq * D < (1 << 16):
        return _sincos_reference(pos, D)

    # Lane-dense stored-row width W (multiple of 128 whenever possible).
    if D % 128 == 0:
        W, G = D, 1
    else:
        l = D * 128 // gcd(D, 128)          # smallest 128-multiple row width
        if l <= 512:
            W = (512 // l) * l              # widen toward 512 lanes
        elif l <= 1024:
            W = l
        else:
            W = D  # TODO(synk): such D falls back to masked (non-128) stores.
        G = W // D

    rows = _cdiv(seq, G)
    rows_padded = _round_up(rows, 8)        # only pad to the sublane tile

    if tile_m is None:
        target_bytes = 2 << 20              # ~2 MiB output block (x2 buffers)
        t = max(8, (target_bytes // (W * 4)) // 8 * 8)
        # Keep >= 4 grid steps (>= 2 per TensorCore on v7x megacore).
        cap = max(8, _round_up(_cdiv(rows_padded, 4), 8))
        tile_m = min(t, cap)
    else:
        tile_m = max(8, _round_up(int(tile_m), 8))
    grid_m = _cdiv(rows_padded, tile_m)     # ragged last block is fine

    # Positions packed G per row + a constant-1 column carrying the phase row.
    pos_padded = jnp.zeros((rows_padded * G,), jnp.float32).at[:seq].set(pos)
    pos_aug = jnp.concatenate(
        [pos_padded.reshape(rows_padded, G),
         jnp.ones((rows_padded, 1), jnp.float32)], axis=1)

    # Expansion matrix (G+1, W): scatter+scale positions onto lanes, add phase.
    lane = jnp.arange(W)
    invf_w = jnp.power(10000.0,
                       -2.0 * ((lane % D) // 2).astype(jnp.float32) / D)
    phase_w = jnp.where(lane % 2 == 1, jnp.float32(math.pi / 2),
                        jnp.float32(0.0))
    sel = (lane[None, :] // D) == jnp.arange(G)[:, None]            # (G, W)
    e_aug = jnp.concatenate(
        [jnp.where(sel, invf_w[None, :], 0.0), phase_w[None, :]],
        axis=0).astype(jnp.float32)                                  # (G+1, W)

    out2d = pl.pallas_call(
        _sincos_kernel,
        out_shape=jax.ShapeDtypeStruct((rows_padded, W), jnp.float32),
        grid_spec=pltpu.PrefetchScalarGridSpec(
            num_scalar_prefetch=0,
            grid=(grid_m,),
            in_specs=[
                pl.BlockSpec((tile_m, G + 1), lambda i: (i, 0)),
                pl.BlockSpec((G + 1, W), lambda i: (0, 0)),  # VMEM-resident
            ],
            out_specs=pl.BlockSpec((tile_m, W), lambda i: (i, 0)),
        ),
        compiler_params=pltpu.CompilerParams(
            dimension_semantics=("parallel",),
        ),
        cost_estimate=pl.CostEstimate(
            flops=2 * rows_padded * W * (G + 1),
            transcendentals=rows_padded * W,
            bytes_accessed=4 * (rows_padded * W + rows_padded * (G + 1)
                                + (G + 1) * W),
        ),
    )(pos_aug, e_aug)

    # Row-major (rows_padded, G*D) is the same bytes as (rows_padded*G, D).
    out = out2d.reshape(rows_padded * G, D)
    if rows_padded * G != seq:              # skip the slice copy when possible
        out = out[:seq]
    return out


def _check(seq, output_dim, key, force_pallas=False, atol=5e-5):
    position_ids = jax.random.randint(key, (seq,), 0, 100).astype(jnp.float32)
    out = jax.block_until_ready(
        sinusoidal_position_embedding(position_ids, output_dim,
                                      force_pallas=force_pallas))
    ref = _sincos_reference(position_ids, output_dim)
    assert out.shape == (seq, output_dim), (out.shape, seq, output_dim)
    err = float(jnp.max(jnp.abs(out - ref)))
    assert err <= atol, (seq, output_dim, err)
    return out


if __name__ == "__main__":
    key = jax.random.PRNGKey(0)
    k0, k1, k2, k3 = jax.random.split(key, 4)

    # Primary module-scale case (seq=8, hidden=32): force the Pallas path so
    # the kernel itself is exercised below the small-shape fast-path threshold.
    _check(8, 32, k0, force_pallas=True)
    # Small case through the pure-JAX fast path.
    _check(10, 32, k1)
    # Larger grouped lane-dense case (kernel path), seq not divisible by G.
    _check(2050, 32, k2)
    # Ungrouped path (output_dim already a multiple of 128).
    _check(320, 256, k3)

    print("KERNEL_OK")
</pallas_src>

<mosaic_0001>
module attributes {stable_mosaic.version = 11 : i64} {
  func.func @_sincos_kernel(%arg0: i32, %arg1: memref<8x17xf32, #tpu.memory_space<vmem>>, %arg2: memref<17x512xf32, #tpu.memory_space<vmem>>, %arg3: memref<8x512xf32, #tpu.memory_space<vmem>>) attributes {dimension_semantics = [#tpu.dimension_semantics<parallel>], iteration_bounds = array<i64: 1>, scalar_prefetch = 0 : i64, scratch_operands = 0 : i64, tpu.core_type = #tpu.core_type<tc>, window_params = [{transform_indices = @transform_0, window_bounds = array<i64: 8, 17>}, {pipeline_mode = #tpu.pipeline_mode<synchronous>, transform_indices = @transform_1, window_bounds = array<i64: 17, 512>}, {transform_indices = @transform_2, window_bounds = array<i64: 8, 512>}]} {
    %c0 = arith.constant 0 : index
    %c0_0 = arith.constant 0 : index
    %0 = vector.load %arg1[%c0, %c0_0] : memref<8x17xf32, #tpu.memory_space<vmem>>, vector<8x17xf32>
    %c0_1 = arith.constant 0 : index
    %c0_2 = arith.constant 0 : index
    %1 = vector.load %arg2[%c0_1, %c0_2] : memref<17x512xf32, #tpu.memory_space<vmem>>, vector<17x512xf32>
    %cst = arith.constant dense<0.000000e+00> : vector<8x512xf32>
    %2 = tpu.matmul %0, %1, %cst {dimension_numbers = #tpu.dot_dimension_numbers<[1], [0], [0], [1], [0, 0, 1, 1], [], []>, precision = #tpu.contract_precision<fp32>} : vector<8x17xf32>, vector<17x512xf32>, vector<8x512xf32> -> vector<8x512xf32>
    %3 = math.sin %2 : vector<8x512xf32>
    %c0_3 = arith.constant 0 : index
    %c0_4 = arith.constant 0 : index
    %4 = vector.load %arg3[%c0_3, %c0_4] : memref<8x512xf32, #tpu.memory_space<vmem>>, vector<8x512xf32>
    tpu.vector_store %arg3[%c0_3, %c0_4], %3 {strides = array<i32>} : memref<8x512xf32, #tpu.memory_space<vmem>>, vector<8x512xf32>,
    return
  }
  func.func @transform_0(%arg0: i32) -> (i32, i32) {
    %c0_i32 = arith.constant 0 : i32
    %c0_i32_0 = arith.constant 0 : i32
    return %arg0, %c0_i32 : i32, i32
  }
  func.func @transform_1(%arg0: i32) -> (i32, i32) {
    %c0_i32 = arith.constant 0 : i32
    %c0_i32_0 = arith.constant 0 : i32
    %c0_i32_1 = arith.constant 0 : i32
    return %c0_i32, %c0_i32_0 : i32, i32
  }
  func.func @transform_2(%arg0: i32) -> (i32, i32) {
    %c0_i32 = arith.constant 0 : i32
    %c0_i32_0 = arith.constant 0 : i32
    return %arg0, %c0_i32 : i32, i32
  }
}

</mosaic_0001>

<bundles_post_ra>
// kernel: tpu_custom_call.1
= control target key start
LH: loop header
LB: loop body
LE: loop exit
PB: predicated region body
PF: predicated region fallthrough
CT: control target
= control target key end

     0   :  { %7 = vsyncpa [#allocation3], 0  ;;  %s2288_s0 = inlined_call_operand.hbm [shape: f32[8,17], index: 0, kind: input, shape index: {}]   ;;  %s2289_s1 = inlined_call_operand.hbm [shape: f32[17,512], index: 1, kind: input, shape index: {}]   ;;  %s2290_s2 = inlined_call_operand.hbm [shape: f32[8,512], index: 2, kind: output, shape index: {}]  }
   0x1   :  { %8 = vsyncpa [#allocation6], 0 }
   0x2   :  { %9 = vsyncpa [#allocation4], 0  ;;  %s1738_s9 = smov [#allocation2]   ;;  %s1739_s11 = smov [#allocation5]  }
   0x3   :  { %s16_s10 = sshll.u32 %s1738_s9, 4  ;;  %s25_s12 = sshll.u32 %s1739_s11, 4  ;;  %s17_s10 = int_to_ptr.vmem [resolvable:$true] %s16_s10  ;;  %s1765_s12 = int_to_ptr.vmem [resolvable:$true] %s25_s12 }
   0x4   :  { %s1666_s15 = scalar_lea.hbm %s2288_s0, 128 }
   0x5   :  { %p1667_p0 = scmp.ne.s32.totalorder %s2288_s0, %s1666_s15  ;;  %p1670_p1 = scmp.lt.u32.totalorder %s1666_s15, %s2288_s0 }
   0x7   :  { %p1672_p2 = pnand %p1670_p1, %p1667_p0 }
   0x9   :  { %1675 = shalt.err (!%p1672_p2)
}
   0xa   :  { %s1676_s20 = scalar_lea.vmem %s17_s10, 128  ;;  %p1681_p4 = scmp.lt.s32.totalorder %s17_s10, %s17_s10 }
   0xb   :  { %p1677_p3 = scmp.ne.s32.totalorder %s17_s10, %s1676_s20  ;;  %p1682_p5 = scmp.lt.s32.totalorder %s1676_s20, %s1676_s20 }
   0xd   :  { %p1683_p6 = por %p1682_p5, %p1681_p4 }
   0xf   :  { %p1684_p7 = pnand %p1683_p6, %p1677_p3 }
  0x11   :  { %1687 = shalt.err (!%p1684_p7)
}
  0x12   :  { %19 = dma.hbm_to_vmem [thread:$0]  %s2288_s0, 128, %s17_s10, [#allocation3]  }
  0x13   :  { %s1688_s25 = scalar_lea.hbm %s2289_s1, 1536 }
  0x14   :  { %p1689_p8 = scmp.ne.s32.totalorder %s2289_s1, %s1688_s25  ;;  %p1692_p9 = scmp.lt.u32.totalorder %s1688_s25, %s2289_s1 }
  0x16   :  { %p1694_p10 = pnand %p1692_p9, %p1689_p8 }
  0x18   :  { %1697 = shalt.err (!%p1694_p10)
}
  0x19   :  { %s1698_s30 = scalar_lea.vmem %s1765_s12, 1536  ;;  %p1703_p12 = scmp.lt.s32.totalorder %s1765_s12, %s1765_s12 }
  0x1a   :  { %p1699_p11 = scmp.ne.s32.totalorder %s1765_s12, %s1698_s30  ;;  %p1704_p13 = scmp.lt.s32.totalorder %s1698_s30, %s1698_s30 }
  0x1c   :  { %p1705_p0 = por %p1704_p13, %p1703_p12 }
  0x1e   :  { %p1706_p1 = pnand %p1705_p0, %p1699_p11 }
  0x20   :  { %1709 = shalt.err (!%p1706_p1)
}
  0x21   :  { %s1740_s0 = smov 512   ;;  %s1741_s3 = smov 32  }
  0x22   :  { %31 = dma.hbm_to_vmem [thread:$0]  %s2289_s1, 1536, %s1765_s12, [#allocation6], %s1740_s0, %s1740_s0, %s1741_s3  }
  0x23   :  { %1732 = dma.done.wait [#allocation3], 128  }
  0x24   :  { %1733 = vsyncadd [#allocation3], 4294967168 }
  0x25   :  { %1734 = dma.done.wait [#allocation6], 1536  }
  0x26   :  { %1735 = vsyncadd [#allocation6], 4294965760  ;;  %v1742_v0 = vmov 0.0   ;;  %v40_v1 = vld [vmem:[#allocation5 + $0x8] sm:$0xff]  ;;  %v42_v3 = vld [vmem:[#allocation5 + $0x18] sm:$0xff]  ;;  %vm55_vm0 = vcmask 1040384  }
  0x27   :  { %138 = vmatprep.mubr.f32.mxu0 %v1742_v0  ;;  %655 = vmatprep.mubr.f32.mxu1 %v1742_v0  ;;  %v44_v2 = vld [vmem:[#allocation5 + $0x28] sm:$0xff]  ;;  %v68_v4 = vand.u32 4294901760, %v40_v1  ;;  %v46_v6 = vld [vmem:[#allocation5 + $0x38] sm:$0xff]  ;;  %v585_v7 = vand.u32 4294901760, %v42_v3  ;;  %v39_v8 = vld [vmem:[#allocation5] sm:$0xff]  ;;  %vm51_vm1 = vcmask 138240  }
  0x28   :  { %v72_v5 = vand.u32 4294901760, %v44_v2  ;;  %v43_v9 = vld [vmem:[#allocation5 + $0x20] sm:$0xff]  ;;  %v589_v10 = vand.u32 4294901760, %v46_v6  ;;  %v70_v11 = vand.u32 4294901760, %v39_v8  ;;  %v41_v13 = vld [vmem:[#allocation5 + $0x10] sm:$0xff]  ;;  %v38_v31 = vld [vmem:[#allocation2] sm:$0xff] }
  0x29   :  { %v74_v12 = vand.u32 4294901760, %v43_v9  ;;  %v45_v14 = vld [vmem:[#allocation5 + $0x30] sm:$0xff]  ;;  %v1800_v16 = vsub.f32 %v40_v1, %v68_v4  ;;  %v1804_v18 = vsub.f32 %v42_v3, %v585_v7  ;;  %v48_v19 = vld [vmem:[#allocation5 + $0x48] sm:$0x1]  ;;  %v50_v20 = vld [vmem:[#allocation5 + $0x58] sm:$0x1] }
  0x2a   :  { %v1798_v15 = vpack.c.bf16 %v72_v5, %v68_v4  ;;  %v1802_v17 = vsub.f32 %v44_v2, %v72_v5  ;;  %v47_v21 = vld [vmem:[#allocation5 + $0x40] sm:$0x1]  ;;  %v1806_v22 = vpack.c.bf16 %v589_v10, %v585_v7  ;;  %v1808_v23 = vsub.f32 %v46_v6, %v589_v10  ;;  %v49_v26 = vld [vmem:[#allocation5 + $0x50] sm:$0x1]  ;;  %s1749_s1 = smov [#allocation7]  }
  0x2b   :  { %v1810_v24 = vpack.c.bf16 %v74_v12, %v70_v11  ;;  %v1812_v25 = vsub.f32 %v39_v8, %v70_v11  ;;  %v1815_v27 = vsub.f32 %v43_v9, %v74_v12  ;;  %v587_v28 = vand.u32 4294901760, %v41_v13  ;;  %s1528_s6 = sshll.u32 %s1749_s1, 4  ;;  %s1529_s6 = int_to_ptr.vmem [resolvable:$true] %s1528_s6 }
  0x2c   :  { %1555 = vmatprep.subr.bf16.mxu0 %v1798_v15  ;;  %v591_v29 = vand.u32 4294901760, %v45_v14  ;;  %v60_v30 = vsel %vm55_vm0, %v48_v19, 0  ;;  %1579 = vmatprep.subr.bf16.mxu1 %v1806_v22  ;;  %v66_v33 = vsel %vm55_vm0, %v50_v20, 0  ;;  %v57_v34 = vsel %vm55_vm0, %v47_v21, 0  ;;  %s1710_s7 = scalar_lea.vmem %s1529_s6, 512  ;;  %p1715_p3 = scmp.lt.s32.totalorder %s1529_s6, %s1529_s6 }
  0x2d   :  { %1557 = vmatpush1.bf16.msra.mxu0 %v1810_v24  ;;  %v1820_v32 = vand.u32 4294901760, %v60_v30  ;;  %v63_v35 = vsel %vm55_vm0, %v49_v26, 0  ;;  %v1827_v37 = vsub.f32 %v41_v13, %v587_v28  ;;  %v1831_v39 = vand.u32 4294901760, %v66_v33  ;;  %p1711_p2 = scmp.ne.s32.totalorder %s1529_s6, %s1710_s7  ;;  %p1716_p4 = scmp.lt.s32.totalorder %s1710_s7, %s1710_s7 }
  0x2e   :  { %v1825_v36 = vpack.c.bf16 %v591_v29, %v587_v28  ;;  %v1829_v38 = vsub.f32 %v45_v14, %v591_v29  ;;  %v1834_v40 = vand.u32 4294901760, %v57_v34  ;;  %v1836_v41 = vand.u32 4294901760, %v63_v35 }
  0x2f   :  { %77 = vmatprep.subr.mxu0 %v1820_v32  ;;  %v53_v42 = vsel %vm51_vm1, %v38_v31, 0  ;;  %v152_v43 = vand.u32 4294901760, %v1800_v16  ;;  %v164_v45 = vand.u32 4294901760, %v1802_v17  ;;  %v669_v46 = vand.u32 4294901760, %v1804_v18  ;;  %p1717_p5 = por %p1716_p4, %p1715_p3 }
  0x30   :  { %1581 = vmatpush1.bf16.msra.mxu1 %v1825_v36  ;;  %v1841_v44 = vand.u32 4294901760, %v53_v42  ;;  %v681_v47 = vand.u32 4294901760, %v1808_v23  ;;  %v1849_v48 = vsub.f32 %v57_v34, %v1834_v40  ;;  %v1852_v49 = vsub.f32 %v63_v35, %v1836_v41 }
  0x31   :  { %594 = vmatprep.subr.mxu1 %v1831_v39  ;;  %79 = vmatpush1.msra.mxu0 %v1834_v40  ;;  %v153_v50 = vsub.f32 %v1800_v16, %v152_v43  ;;  %v158_v51 = vand.u32 4294901760, %v1812_v25  ;;  %v165_v53 = vsub.f32 %v1802_v17, %v164_v45  ;;  %v670_v54 = vsub.f32 %v1804_v18, %v669_v46  ;;  %p1718_p6 = pnand %p1717_p5, %p1711_p2 }
  0x32   :  { %v1859_v52 = vsub.f32 %v53_v42, %v1841_v44  ;;  %v682_v55 = vsub.f32 %v1808_v23, %v681_v47  ;;  %v170_v58 = vand.u32 4294901760, %v1815_v27  ;;  %v675_v59 = vand.u32 4294901760, %v1827_v37 }
  0x33   :  { %v154_v56 = vand.u32 4294901760, %v153_v50  ;;  %v159_v57 = vsub.f32 %v1812_v25, %v158_v51  ;;  %v166_v61 = vand.u32 4294901760, %v165_v53  ;;  %v671_v62 = vand.u32 4294901760, %v670_v54 }
  0x34   :  { %596 = vmatpush1.msra.mxu1 %v1836_v41  ;;  %v1877_v60 = vand.u32 4294901760, %v1859_v52  ;;  %v683_v63 = vand.u32 4294901760, %v682_v55  ;;  %v171_v2 = vsub.f32 %v1815_v27, %v170_v58  ;;  %v676_v3 = vsub.f32 %v1827_v37, %v675_v59 }
  0x35   :  { %v160_v1 = vand.u32 4294901760, %v159_v57  ;;  %v687_v4 = vand.u32 4294901760, %v1829_v38  ;;  %v1558_v6 = vpack.c.bf16 %v166_v61, %v154_v56  ;;  %v1889_v8 = vsub.f32 %v60_v30, %v1820_v32 }
  0x36   :  { %v142_v5 = vsub.f32 %v1859_v52, %v1877_v60  ;;  %v1582_v7 = vpack.c.bf16 %v683_v63, %v671_v62  ;;  %v172_v9 = vand.u32 4294901760, %v171_v2  ;;  %v677_v10 = vand.u32 4294901760, %v676_v3 }
  0x37   :  { %v688_v11 = vsub.f32 %v1829_v38, %v687_v4  ;;  %v1895_v12 = vsub.f32 %v66_v33, %v1831_v39  ;;  %1559 = vmatprep.subr.bf16.mxu0 %v1558_v6  ;;  %v176_v14 = vand.u32 4294901760, %v1889_v8  ;;  %v182_v19 = vand.u32 4294901760, %v1849_v48 }
  0x38   :  { %v143_v13 = vand.u32 4294901760, %v142_v5  ;;  %1583 = vmatprep.subr.bf16.mxu1 %v1582_v7  ;;  %v699_v20 = vand.u32 4294901760, %v1852_v49  ;;  %v1560_v21 = vpack.c.bf16 %v172_v9, %v160_v1  ;;  %v1562_v50 = vpack.c.bf16 %v1802_v17, %v1800_v16 }
  0x39   :  { %v689_v26 = vand.u32 4294901760, %v688_v11  ;;  %v693_v28 = vand.u32 4294901760, %v1895_v12  ;;  %v177_v29 = vsub.f32 %v1889_v8, %v176_v14  ;;  %v183_v30 = vsub.f32 %v1849_v48, %v182_v19 }
  0x3a   :  { %144 = vmatmul.mubr.f32.vlgmr.msra.gmra.mrb[0].mxu0 %v143_v13  ;;  %661 = vmatmul.mubr.f32.vlgmr.msra.gmra.mrb[0].mxu1 %v143_v13  ;;  %v700_v31 = vsub.f32 %v1852_v49, %v699_v20  ;;  %v1586_v55 = vpack.c.bf16 %v1808_v23, %v1804_v18  ;;  %v1564_v56 = vpack.c.bf16 %v1815_v27, %v1812_v25 }
  0x3b   :  { %1561 = vmatpush1.bf16.msra.mxu0 %v1560_v21  ;;  %v1584_v33 = vpack.c.bf16 %v689_v26, %v677_v10  ;;  %v694_v34 = vsub.f32 %v1895_v12, %v693_v28  ;;  %244 = vmatprep.mubr.f32.mxu0 %v1742_v0  ;;  %v178_v35 = vand.u32 4294901760, %v177_v29  ;;  %v184_v42 = vand.u32 4294901760, %v183_v30 }
  0x3c   :  { %761 = vmatprep.mubr.f32.mxu1 %v1742_v0  ;;  %v701_v54 = vand.u32 4294901760, %v700_v31  ;;  %v1588_v57 = vpack.c.bf16 %v1829_v38, %v1827_v37  ;;  %v1570_v61 = vpack.c.bf16 %v164_v45, %v152_v43  ;;  %v1594_v62 = vpack.c.bf16 %v681_v47, %v669_v46 }
  0x3d   :  { %1585 = vmatpush1.bf16.msra.mxu1 %v1584_v33  ;;  %v695_v53 = vand.u32 4294901760, %v694_v34  ;;  %179 = vmatprep.subr.mxu0 %v178_v35  ;;  %v1572_v16 = vpack.c.bf16 %v170_v58, %v158_v51  ;;  %v1596_v17 = vpack.c.bf16 %v687_v4, %v675_v59  ;;  %v1743_v4 = vmov 683565275  }
  0x3e   :  { %v1745_v10 = vmov 2131351028   ;;  %v1748_v30 = vmov 1326507024  }
  0x3f   :  { %696 = vmatprep.subr.mxu1 %v695_v53  ;;  %185 = vmatpush1.msra.mxu0 %v184_v42 }
  0x40   :  { %1563 = vmatprep.subr.bf16.mxu0 %v1562_v50 }
  0x41   :  { %702 = vmatpush1.msra.mxu1 %v701_v54 }
  0x42   :  { %246 = vmatmul.mubr.f32.vlgmr.msra.gmra.mrb[0].mxu0 %v1841_v44  ;;  %763 = vmatmul.mubr.f32.vlgmr.msra.gmra.mrb[0].mxu1 %v1841_v44 }
  0x43   :  { %1587 = vmatprep.subr.bf16.mxu1 %v1586_v55  ;;  %1565 = vmatpush1.bf16.msra.mxu0 %v1564_v56 }
  0x44   :  { %1589 = vmatpush1.bf16.msra.mxu1 %v1588_v57  ;;  %266 = vmatprep.subr.mxu0 %v1889_v8  ;;  %v1744_v8 = vmov 2475754826  }
  0x45   :  { %783 = vmatprep.subr.mxu1 %v1895_v12  ;;  %328 = vmatprep.mubr.f32.mxu0 %v1742_v0  ;;  %v1746_v12 = vmov 2102212464  }
  0x46   :  { %845 = vmatprep.mubr.f32.mxu1 %v1742_v0 }
  0x47   :  { %269 = vmatpush1.msra.mxu0 %v1849_v48 }
  0x48   :  { %786 = vmatpush1.msra.mxu1 %v1852_v49  ;;  %1567 = vmatprep.subr.bf16.mxu0 %v1798_v15 }
  0x49   :  { %1591 = vmatprep.subr.bf16.mxu1 %v1806_v22 }
  0x4a   :  { %331 = vmatmul.mubr.f32.vlgmr.msra.gmra.mrb[0].mxu0 %v1859_v52  ;;  %848 = vmatmul.mubr.f32.vlgmr.msra.gmra.mrb[0].mxu1 %v1859_v52 }
  0x4b   :  { %1569 = vmatpush1.bf16.msra.mxu0 %v1810_v24  ;;  %1593 = vmatpush1.bf16.msra.mxu1 %v1825_v36 }
  0x4c   :  { %346 = vmatprep.subr.mxu0 %v1820_v32  ;;  %863 = vmatprep.subr.mxu1 %v1831_v39 }
  0x4d   :  { %407 = vmatprep.mubr.f32.mxu0 %v1742_v0  ;;  %924 = vmatprep.mubr.f32.mxu1 %v1742_v0 }
  0x4f   :  { %348 = vmatpush1.msra.mxu0 %v1834_v40  ;;  %865 = vmatpush1.msra.mxu1 %v1836_v41 }
  0x50   :  { %1571 = vmatprep.subr.bf16.mxu0 %v1570_v61  ;;  %1595 = vmatprep.subr.bf16.mxu1 %v1594_v62 }
  0x52   :  { %411 = vmatmul.mubr.f32.vlgmr.msra.gmra.mrb[0].mxu0 %v1877_v60  ;;  %928 = vmatmul.mubr.f32.vlgmr.msra.gmra.mrb[0].mxu1 %v1877_v60 }
  0x53   :  { %1573 = vmatpush1.bf16.msra.mxu0 %v1572_v16  ;;  %1597 = vmatpush1.bf16.msra.mxu1 %v1596_v17 }
  0x54   :  { %436 = vmatprep.subr.mxu0 %v176_v14  ;;  %953 = vmatprep.subr.mxu1 %v693_v28  ;;  %v1747_v14 = vmov 920167782  }
  0x55   :  { %499 = vmatprep.mubr.f32.mxu0 %v1742_v0  ;;  %1016 = vmatprep.mubr.f32.mxu1 %v1742_v0 }
  0x57   :  { %440 = vmatpush1.msra.mxu0 %v182_v19  ;;  %957 = vmatpush1.msra.mxu1 %v699_v20 }
  0x58   :  { %1575 = vmatprep.subr.bf16.mxu0 %v1798_v15  ;;  %1599 = vmatprep.subr.bf16.mxu1 %v1806_v22 }
  0x5a   :  { %501 = vmatmul.mubr.f32.vlgmr.msra.gmra.mrb[0].mxu0 %v1841_v44  ;;  %1018 = vmatmul.mubr.f32.vlgmr.msra.gmra.mrb[0].mxu1 %v1841_v44 }
  0x5b   :  { %1577 = vmatpush1.bf16.msra.mxu0 %v1810_v24  ;;  %1601 = vmatpush1.bf16.msra.mxu1 %v1825_v36 }
  0x5c   :  { %516 = vmatprep.subr.mxu0 %v1820_v32  ;;  %1033 = vmatprep.subr.mxu1 %v1831_v39 }
  0x5d   :  { %577 = vmatprep.mubr.f32.mxu0 %v1742_v0  ;;  %1094 = vmatprep.mubr.f32.mxu1 %v1742_v0 }
  0x5f   :  { %518 = vmatpush1.msra.mxu0 %v1834_v40  ;;  %1035 = vmatpush1.msra.mxu1 %v1836_v41 }
  0x62   :  { %579 = vmatmul.mubr.f32.vlgmr.msra.gmra.mrb[0].mxu0 %v1841_v44  ;;  %1096 = vmatmul.mubr.f32.vlgmr.msra.gmra.mrb[0].mxu1 %v1841_v44 }
 0x135   :  { %v1977_v15 = vpop.f32.mrb[0].mxu0  ;;  %v1979_v18 = vpop.f32.mrb[0].mxu1 }
 0x136   :  { %v1102_v22 = vand.u32 2147483647, %v1977_v15  ;;  %v1105_v23 = vand.u32 2139095040, %v1977_v15  ;;  %v1983_v24 = vpop.f32.mrb[1].mxu0  ;;  %v1985_v25 = vpop.f32.mrb[1].mxu1  ;;  %v1313_v27 = vand.u32 2139095040, %v1979_v18 }
 0x137   :  { %v1310_v0 = vand.u32 2147483647, %v1979_v18  ;;  %v1209_v39 = vand.u32 2139095040, %v1983_v24  ;;  %v1206_v48 = vand.u32 2147483647, %v1983_v24  ;;  %vm1104_vm15 = vcmp.lt.s32.totalorder %v1977_v15, 0 }
 0x138   :  { %v1106_v32 = vshrl.u32 %v1105_v23, 23  ;;  %v1109_v36 = vand.u32 8388607, %v1102_v22  ;;  %v1314_v37 = vshrl.u32 %v1313_v27, 23  ;;  %vm2106_vm1 = vcmp.le.f32.partialorder %v1102_v22, 0.7853982 }
 0x139   :  { %v1317_v38 = vand.u32 8388607, %v1310_v0  ;;  %v1210_v43 = vshrl.u32 %v1209_v39, 23  ;;  %v2001_v1 = vand.u32 8388607, %v1206_v48 }
 0x13a   :  { %v1538_v40 = vadd.s32 4294967169, %v1106_v32  ;;  %v1546_v41 = vadd.s32 4294967169, %v1314_v37  ;;  %v1110_v44 = vor.u32 8388608, %v1109_v36 }
 0x13b   :  { %v1318_v46 = vor.u32 8388608, %v1317_v38  ;;  %v1542_v49 = vadd.s32 4294967169, %v1210_v43 }
 0x13c   :  { %v1112_v45 = vadd.s32 1, %v1538_v40  ;;  %v1320_v47 = vadd.s32 1, %v1546_v41  ;;  %v1995_v60 = vshll.u32 %v1110_v44, 8 }
 0x13d   :  { %v1997_v63 = vshll.u32 %v1318_v46, 8  ;;  %v2003_v2 = vadd.s32 1, %v1542_v49 }
 0x13e   :  { %vm1113_vm2 = vcmp.gt.s32.totalorder %v1112_v45, 0  ;;  %vm1321_vm3 = vcmp.gt.s32.totalorder %v1320_v47, 0 }
 0x13f   :  { %v1114_v51 = vsel %vm1113_vm2, %v1112_v45, 0  ;;  %v1322_v59 = vsel %vm1321_vm3, %v1320_v47, 0  ;;  %vm1217_vm8 = vcmp.gt.s32.totalorder %v2003_v2, 0 }
 0x140   :  { %v1115_v52 = vshrl.u32 %v1114_v51, 5  ;;  %v1116_v58 = vand.u32 31, %v1114_v51  ;;  %v2006_v6 = vshrl.u32 %v1322_v59, 5  ;;  %v1324_v7 = vand.u32 31, %v1322_v59 }
 0x142   :  { %v1117_v3 = vsub.s32 32, %v1116_v58  ;;  %v1119_v5 = vshll.u32 %v1743_v4, %v1116_v58  ;;  %v1122_v9 = vshll.u32 %v1744_v8, %v1116_v58  ;;  %v1125_v11 = vshll.u32 %v1745_v10, %v1116_v58 }
 0x143   :  { %v1128_v13 = vshll.u32 %v1746_v12, %v1116_v58  ;;  %v1131_v19 = vshll.u32 %v1747_v14, %v1116_v58  ;;  %vm1134_vm4 = vcmp.lt.s32.totalorder %v1115_v52, 1  ;;  %vm1135_vm5 = vcmp.lt.s32.totalorder %v1115_v52, 2 }
 0x144   :  { %v1120_v20 = vshrl.u32 %v1744_v8, %v1117_v3  ;;  %v1123_v21 = vshrl.u32 %v1745_v10, %v1117_v3  ;;  %v1126_v26 = vshrl.u32 %v1746_v12, %v1117_v3  ;;  %v1118_v28 = vshrl.u32 %v1743_v4, %v1117_v3 }
 0x145   :  { %v1129_v29 = vshrl.u32 %v1747_v14, %v1117_v3  ;;  %v1132_v31 = vshrl.u32 %v1748_v30, %v1117_v3  ;;  %v1325_v42 = vsub.s32 32, %v1324_v7  ;;  %vm1136_vm6 = vcmp.lt.s32.totalorder %v1115_v52, 3 }
 0x146   :  { %v1121_v33 = vor.u32 %v1120_v20, %v1119_v5  ;;  %v1124_v34 = vor.u32 %v1123_v21, %v1122_v9  ;;  %v1127_v35 = vor.u32 %v1126_v26, %v1125_v11  ;;  %vm1137_vm7 = vcmp.lt.s32.totalorder %v1115_v52, 4 }
 0x147   :  { %v1130_v50 = vor.u32 %v1129_v29, %v1128_v13  ;;  %v1133_v53 = vor.u32 %v1132_v31, %v1131_v19  ;;  %v1327_v17 = vshll.u32 %v1743_v4, %v1324_v7  ;;  %v1328_v32 = vshrl.u32 %v1744_v8, %v1325_v42 }
 0x148   :  { %v1138_v54 = vsel %vm1134_vm4, %v1118_v28, %v1121_v33  ;;  %v1139_v55 = vsel %vm1137_vm7, %v1127_v35, 2102212464  ;;  %v1142_v56 = vsel %vm1134_vm4, %v1121_v33, %v1124_v34  ;;  %v1146_v57 = vsel %vm1134_vm4, %v1124_v34, %v1127_v35 }
 0x149   :  { %v1140_v61 = vsel %vm1136_vm6, %v1124_v34, %v1139_v55  ;;  %v1143_v62 = vsel %vm1137_vm7, %v1130_v50, 920167782  ;;  %v1147_v16 = vsel %vm1137_vm7, %v1133_v53, 1326507024  ;;  %v1330_v36 = vshll.u32 %v1744_v8, %v1324_v7 }
 0x14a   :  { %v1144_v23 = vsel %vm1136_vm6, %v1127_v35, %v1143_v62  ;;  %v1148_v27 = vsel %vm1136_vm6, %v1130_v50, %v1147_v16  ;;  %v1141_v37 = vsel %vm1135_vm5, %v1138_v54, %v1140_v61  ;;  %v1331_v40 = vshrl.u32 %v1745_v10, %v1325_v42 }
 0x14b   :  { %v1145_v38 = vsel %vm1135_vm5, %v1142_v56, %v1144_v23  ;;  %v1149_v39 = vsel %vm1135_vm5, %v1146_v57, %v1148_v27  ;;  %v1329_v46 = vor.u32 %v1328_v32, %v1327_v17  ;;  %v1333_v49 = vshll.u32 %v1745_v10, %v1324_v7 }
 0x14c   :  { %v2030_v41 = vmul.u32.u64.low %v1995_v60, %v1149_v39  ;;  %v2031_v43 = vmul.u32.u64.high %v1995_v60, %v1149_v39, %v2030_v41  ;;  %v2034_v44 = vmul.u32.u64.low %v1995_v60, %v1145_v38  ;;  %v2035_v45 = vmul.u32.u64.high %v1995_v60, %v1145_v38, %v2034_v44 }
 0x14d   :  { %v1332_v47 = vor.u32 %v1331_v40, %v1330_v36  ;;  %v1334_v51 = vshrl.u32 %v1746_v12, %v1325_v42  ;;  %v1326_v52 = vshrl.u32 %v1743_v4, %v1325_v42  ;;  %v1336_v58 = vshll.u32 %v1746_v12, %v1324_v7 }
 0x14e   :  { %v1337_v59 = vshrl.u32 %v1747_v14, %v1325_v42  ;;  %v1340_v3 = vshrl.u32 %v1748_v30, %v1325_v42  ;;  %v1157_v5 = vmul.u32 %v1995_v60, %v1141_v37  ;;  %v1339_v11 = vshll.u32 %v1747_v14, %v1324_v7 }
 0x14f   :  { %v1335_v9 = vor.u32 %v1334_v51, %v1333_v49  ;;  %vm1342_vm9 = vcmp.lt.s32.totalorder %v2006_v6, 1  ;;  %vm1159_vm10 = vc.u32 %v2031_v43, %v2034_v44  ;;  %v1160_v13 = vadd.s32 1, %v2035_v45 }
 0x150   :  { %v1338_v19 = vor.u32 %v1337_v59, %v1336_v58  ;;  %vm1343_vm11 = vcmp.lt.s32.totalorder %v2006_v6, 2  ;;  %v1341_v20 = vor.u32 %v1340_v3, %v1339_v11  ;;  %vm1344_vm12 = vcmp.lt.s32.totalorder %v2006_v6, 3 }
 0x151   :  { %vm1345_vm13 = vcmp.lt.s32.totalorder %v2006_v6, 4  ;;  %v1350_v21 = vsel %vm1342_vm9, %v1329_v46, %v1332_v47  ;;  %v1161_v60 = vsel %vm1159_vm10, %v1160_v13, %v2035_v45  ;;  %v1354_v28 = vsel %vm1342_vm9, %v1332_v47, %v1335_v9 }
 0x152   :  { %v1347_v26 = vsel %vm1345_vm13, %v1335_v9, 2102212464  ;;  %v1351_v7 = vsel %vm1345_vm13, %v1338_v19, 920167782  ;;  %v1162_v29 = vadd.s32 %v1161_v60, %v1157_v5  ;;  %v1346_v31 = vsel %vm1342_vm9, %v1326_v52, %v1329_v46 }
 0x153   :  { %v1352_v33 = vsel %vm1344_vm12, %v1335_v9, %v1351_v7  ;;  %v1355_v34 = vsel %vm1345_vm13, %v1341_v20, 1326507024  ;;  %v1348_v35 = vsel %vm1344_vm12, %v1332_v47, %v1347_v26  ;;  %v1218_v53 = vsel %vm1217_vm8, %v2003_v2, 0 }
 0x154   :  { %v1353_v42 = vsel %vm1343_vm11, %v1350_v21, %v1352_v33  ;;  %v1356_v50 = vsel %vm1344_vm12, %v1338_v19, %v1355_v34  ;;  %v1163_v54 = vadd.s32 536870912, %v1162_v29  ;;  %v1214_v16 = vor.u32 8388608, %v2001_v1 }
 0x155   :  { %v1357_v55 = vsel %vm1343_vm11, %v1354_v28, %v1356_v50  ;;  %v2062_v56 = vmul.u32.u64.low %v1997_v63, %v1353_v42  ;;  %v2063_v57 = vmul.u32.u64.high %v1997_v63, %v1353_v42, %v2062_v56  ;;  %v1417_v17 = vand.u32 2139095040, %v1985_v25 }
 0x156   :  { %v2067_v61 = vmul.u32.u64.low %v1997_v63, %v1357_v55  ;;  %v2068_v62 = vmul.u32.u64.high %v1997_v63, %v1357_v55, %v2067_v61  ;;  %v1164_v23 = vshrl.u32 %v1163_v54, 30  ;;  %v1349_v2 = vsel %vm1343_vm11, %v1346_v31, %v1348_v35 }
 0x157   :  { %v1220_v27 = vand.u32 31, %v1218_v53  ;;  %v1368_v36 = vadd.s32 1, %v2063_v57  ;;  %v1414_v38 = vand.u32 2147483647, %v1985_v25  ;;  %v1365_v39 = vmul.u32 %v1997_v63, %v1349_v2 }
 0x158   :  { %v1165_v32 = vshll.u32 %v1164_v23, 30  ;;  %vm1367_vm14 = vc.u32 %v2068_v62, %v2062_v56  ;;  %v2079_v40 = vshll.u32 %v1214_v16, 8  ;;  %v1418_v1 = vshrl.u32 %v1417_v17, 23 }
 0x159   :  { %v1221_v37 = vsub.s32 32, %v1220_v27  ;;  %v1369_v6 = vsel %vm1367_vm14, %v1368_v36, %v2063_v57  ;;  %v2084_v45 = vshrl.u32 %v1218_v53, 5  ;;  %v1223_v46 = vshll.u32 %v1743_v4, %v1220_v27 }
 0x15a   :  { %v2081_v41 = vsub.s32 %v1162_v29, %v1165_v32  ;;  %v1370_v47 = vadd.s32 %v1369_v6, %v1365_v39  ;;  %v1226_v63 = vshll.u32 %v1744_v8, %v1220_v27  ;;  %v1158_v52 = vadd.s32 %v2034_v44, %v2031_v43 }
 0x15b   :  { %v1224_v49 = vshrl.u32 %v1744_v8, %v1221_v37  ;;  %v1227_v51 = vshrl.u32 %v1745_v10, %v1221_v37  ;;  %v1229_v59 = vshll.u32 %v1745_v10, %v1220_v27  ;;  %v1230_v3 = vshrl.u32 %v1746_v12, %v1221_v37 }
 0x15c   :  { %v1168_v58 = vsub.s32 0, %v2081_v41  ;;  %v1371_v5 = vadd.s32 536870912, %v1370_v47  ;;  %v1550_v13 = vadd.s32 4294967169, %v1418_v1  ;;  %v1232_v21 = vshll.u32 %v1746_v12, %v1220_v27 }
 0x15d   :  { %v1225_v9 = vor.u32 %v1224_v49, %v1223_v46  ;;  %v1228_v11 = vor.u32 %v1227_v51, %v1226_v63  ;;  %v1231_v20 = vor.u32 %v1230_v3, %v1229_v59  ;;  %v1233_v60 = vshrl.u32 %v1747_v14, %v1221_v37 }
 0x15e   :  { %v1539_v19 = vmin.u32 %v1168_v58, %v2081_v41  ;;  %v2099_v26 = vshrl.u32 %v1371_v5, 30  ;;  %v1235_v43 = vshll.u32 %v1747_v14, %v1220_v27  ;;  %v1236_v44 = vshrl.u32 %v1748_v30, %v1221_v37 }
 0x15f   :  { %vm1238_vm0 = vcmp.lt.s32.totalorder %v2084_v45, 1  ;;  %v1188_v29 = vsub.s32 4, %v1164_v23  ;;  %v1234_v31 = vor.u32 %v1233_v60, %v1232_v21  ;;  %vm1239_vm2 = vcmp.lt.s32.totalorder %v2084_v45, 2 }
 0x160   :  { %v1170_v28 = vclz %v1539_v19  ;;  %v1373_v33 = vshll.u32 %v2099_v26, 30  ;;  %v1237_v34 = vor.u32 %v1236_v44, %v1235_v43  ;;  %vm1240_vm3 = vcmp.lt.s32.totalorder %v2084_v45, 3 }
 0x161   :  { %vm1241_vm4 = vcmp.lt.s32.totalorder %v2084_v45, 4  ;;  %v1246_v42 = vsel %vm1238_vm0, %v1225_v9, %v1228_v11  ;;  %v1250_v50 = vsel %vm1238_vm0, %v1228_v11, %v1231_v20  ;;  %v1189_v61 = vsel %vm1104_vm15, %v1188_v29, %v1164_v23 }
 0x162   :  { %v1540_v35 = vadd.s32 4294967294, %v1170_v28  ;;  %v1247_v22 = vsel %vm1241_vm4, %v1234_v31, 920167782  ;;  %v2118_v53 = vsub.s32 %v1370_v47, %v1373_v33  ;;  %v1243_v54 = vsel %vm1241_vm4, %v1231_v20, 2102212464 }
 0x163   :  { %v1248_v55 = vsel %vm1240_vm3, %v1231_v20, %v1247_v22  ;;  %v1251_v57 = vsel %vm1241_vm4, %v1237_v34, 1326507024  ;;  %v1222_v16 = vshrl.u32 %v1743_v4, %v1221_v37  ;;  %vm1312_vm6 = vcmp.lt.s32.totalorder %v1979_v18, 0 }
 0x164   :  { %vm1541_vm5 = vcmp.lt.s32.totalorder %v1540_v35, 0  ;;  %v1252_v17 = vsel %vm1240_vm3, %v1234_v31, %v1251_v57  ;;  %v1376_v27 = vsub.s32 0, %v2118_v53  ;;  %v1249_v32 = vsel %vm1239_vm2, %v1246_v42, %v1248_v55 }
 0x165   :  { %v1173_v2 = vsel %vm1541_vm5, 0, %v1540_v35  ;;  %v1253_v36 = vsel %vm1239_vm2, %v1250_v50, %v1252_v17  ;;  %v1242_v23 = vsel %vm1238_vm0, %v1222_v16, %v1225_v9  ;;  %v1244_v37 = vsel %vm1240_vm3, %v1228_v11, %v1243_v54 }
 0x166   :  { %v1174_v39 = vsub.s32 32, %v1173_v2  ;;  %v1178_v1 = vsub.s32 4294967266, %v1173_v2  ;;  %v1175_v6 = vshll.u32 %v2081_v41, %v1173_v2  ;;  %v1547_v46 = vmin.u32 %v1376_v27, %v2118_v53 }
 0x167   :  { %v2140_v47 = vmul.u32.u64.low %v2079_v40, %v1253_v36  ;;  %v2141_v49 = vmul.u32.u64.high %v2079_v40, %v1253_v36, %v2140_v47  ;;  %v2144_v58 = vmul.u32.u64.low %v2079_v40, %v1249_v32  ;;  %v2145_v59 = vmul.u32.u64.high %v2079_v40, %v1249_v32, %v2144_v58 }
 0x168   :  { %v1176_v63 = vshrl.u32 %v1158_v52, %v1174_v39  ;;  %v1179_v51 = vadd.s32 127, %v1178_v1  ;;  %v1191_v3 = vsel %vm2106_vm1, 0, %v1189_v61  ;;  %vm2152_vm7 = vcmp.le.f32.partialorder %v1310_v0, 0.7853982 }
 0x169   :  { %v1378_v5 = vclz %v1547_v46  ;;  %v1424_v9 = vadd.s32 1, %v1550_v13  ;;  %v1245_v52 = vsel %vm1239_vm2, %v1242_v23, %v1244_v37  ;;  %v2160_v20 = vand.u32 8388607, %v1414_v38 }
 0x16a   :  { %v1177_v11 = vor.u32 %v1176_v63, %v1175_v6  ;;  %v1180_v19 = vshll.u32 %v1179_v51, 23  ;;  %v1396_v60 = vsub.s32 4, %v2099_v26  ;;  %vm1263_vm8 = vc.u32 %v2141_v49, %v2144_v58 }
 0x16b   :  { %v1548_v21 = vadd.s32 4294967294, %v1378_v5  ;;  %vm1425_vm9 = vcmp.gt.s32.totalorder %v1424_v9, 0  ;;  %v1195_v43 = vadd.s32 3, %v1191_v3  ;;  %v1264_v13 = vadd.s32 1, %v2145_v59 }
 0x16c   :  { %v1181_v0 = vor.u32 4788187, %v1180_v19  ;;  %v1426_v44 = vsel %vm1425_vm9, %v1424_v9, 0  ;;  %v1366_v45 = vadd.s32 %v2062_v56, %v2068_v62  ;;  %v1261_v28 = vmul.u32 %v2079_v40, %v1245_v52 }
 0x16d   :  { %vm1549_vm10 = vcmp.lt.s32.totalorder %v1548_v21, 0  ;;  %v1428_v29 = vand.u32 31, %v1426_v44  ;;  %v1184_v33 = vcvt.s32.f32 %v1177_v11  ;;  %v1265_v35 = vsel %vm1263_vm8, %v1264_v13, %v2145_v59 }
 0x16e   :  { %v1182_v31 = vand.u32 2147483647, %v1181_v0  ;;  %v1381_v34 = vsel %vm1549_vm10, 0, %v1548_v21  ;;  %v1397_v50 = vsel %vm1312_vm6, %v1396_v60, %v2099_v26  ;;  %v1266_v54 = vadd.s32 %v1265_v35, %v1261_v28 }
 0x16f   :  { %v1382_v42 = vsub.s32 32, %v1381_v34  ;;  %v1386_v22 = vsub.s32 4294967266, %v1381_v34  ;;  %v2173_v57 = vand.u32 3, %v1195_v43  ;;  %v1422_v56 = vor.u32 8388608, %v2160_v20 }
 0x170   :  { %v1185_v55 = vmul.f32 %v1184_v33, %v1182_v31  ;;  %v1429_v62 = vsub.s32 32, %v1428_v29  ;;  %v1383_v40 = vshll.u32 %v2118_v53, %v1381_v34  ;;  %v1267_v17 = vadd.s32 536870912, %v1266_v54 }
 0x171   :  { %v1384_v61 = vshrl.u32 %v1366_v45, %v1382_v42  ;;  %v1387_v16 = vadd.s32 127, %v1386_v22  ;;  %v1399_v27 = vsel %vm2152_vm7, 0, %v1397_v50  ;;  %v2179_v32 = vshrl.u32 %v1426_v44, 5 }
 0x172   :  { %v1186_v2 = vxor.u32 2147483648, %v1185_v55  ;;  %v1431_v26 = vshll.u32 %v1743_v4, %v1428_v29  ;;  %v2182_v1 = vshrl.u32 %v1267_v17, 30  ;;  %v1438_v23 = vshrl.u32 %v1746_v12, %v1429_v62 }
 0x173   :  { %v1385_v36 = vor.u32 %v1384_v61, %v1383_v40  ;;  %v1388_v39 = vshll.u32 %v1387_v16, 23  ;;  %v1432_v37 = vshrl.u32 %v1744_v8, %v1429_v62  ;;  %v1434_v6 = vshll.u32 %v1744_v8, %v1428_v29 }
 0x174   :  { %v1187_v53 = vsel %vm1104_vm15, %v1186_v2, %v1185_v55  ;;  %v1435_v46 = vshrl.u32 %v1745_v10, %v1429_v62  ;;  %v1269_v51 = vshll.u32 %v2182_v1, 30  ;;  %v1437_v59 = vshll.u32 %v1745_v10, %v1428_v29 }
 0x175   :  { %v1190_v47 = vsel %vm2106_vm1, %v1977_v15, %v1187_v53  ;;  %v1389_v63 = vor.u32 4788187, %v1388_v39  ;;  %v1392_v3 = vcvt.s32.f32 %v1385_v36  ;;  %v1440_v5 = vshll.u32 %v1746_v12, %v1428_v29 }
 0x176   :  { %1650 = vcosq.f32 %v1190_v47  ;;  %v1441_v9 = vshrl.u32 %v1747_v14, %v1429_v62  ;;  %v2197_v8 = vsub.s32 %v1266_v54, %v1269_v51  ;;  %v1439_v19 = vor.u32 %v1438_v23, %v1437_v59 }
 0x177   :  { %1652 = vsinq.f32 %v1190_v47  ;;  %v1390_v11 = vand.u32 2147483647, %v1389_v63  ;;  %v1433_v52 = vor.u32 %v1432_v37, %v1431_v26  ;;  %v1436_v20 = vor.u32 %v1435_v46, %v1434_v6 }
 0x178   :  { %v1442_v7 = vor.u32 %v1441_v9, %v1440_v5  ;;  %v1444_v21 = vshrl.u32 %v1748_v30, %v1429_v62  ;;  %v1403_v0 = vadd.s32 3, %v1399_v27  ;;  %v1272_v10 = vsub.s32 0, %v2197_v8 }
 0x179   :  { %v1393_v60 = vmul.f32 %v1392_v3, %v1390_v11  ;;  %v1430_v43 = vshrl.u32 %v1743_v4, %v1429_v62  ;;  %v1443_v12 = vshll.u32 %v1747_v14, %v1428_v29  ;;  %vm1449_vm11 = vcmp.lt.s32.totalorder %v2179_v32, 4 }
 0x17a   :  { %v1462_v13 = vshll.u32 %v1422_v56, 8  ;;  %v1543_v45 = vmin.u32 %v1272_v10, %v2197_v8  ;;  %vm1446_vm12 = vcmp.lt.s32.totalorder %v2179_v32, 1  ;;  %v1451_v28 = vsel %vm1449_vm11, %v1439_v19, 2102212464 }
 0x17b   :  { %v1394_v44 = vxor.u32 2147483648, %v1393_v60  ;;  %v1445_v30 = vor.u32 %v1444_v21, %v1443_v12  ;;  %vm1448_vm13 = vcmp.lt.s32.totalorder %v2179_v32, 3  ;;  %v1454_v31 = vsel %vm1446_vm12, %v1433_v52, %v1436_v20 }
 0x17c   :  { %v1455_v4 = vsel %vm1449_vm11, %v1442_v7, 920167782  ;;  %vm1197_vm14 = vcmp.lt.s32.totalorder %v2173_v57, 2  ;;  %vm1194_vm15 = vweird.f32 %v1977_v15  ;;  %v1274_v29 = vclz %v1543_v45 }
 0x17d   :  { %v1395_v14 = vsel %vm1312_vm6, %v1394_v44, %v1393_v60  ;;  %v1456_v33 = vsel %vm1448_vm13, %v1439_v19, %v1455_v4  ;;  %vm1198_vm0 = vcmp.eq.s32.totalorder %v2173_v57, 0  ;;  %vm1447_vm1 = vcmp.lt.s32.totalorder %v2179_v32, 2 }
 0x17e   :  { %v1398_v34 = vsel %vm2152_vm7, %v1979_v18, %v1395_v14  ;;  %v1450_v35 = vsel %vm1446_vm12, %v1430_v43, %v1433_v52  ;;  %v1452_v42 = vsel %vm1448_vm13, %v1436_v20, %v1451_v28  ;;  %v1544_v22 = vadd.s32 4294967294, %v1274_v29 }
 0x17f   :  { %1654 = vcosq.f32 %v1398_v34  ;;  %v1457_v50 = vsel %vm1447_vm1, %v1454_v31, %v1456_v33  ;;  %v1458_v54 = vsel %vm1446_vm12, %v1436_v20, %v1439_v19  ;;  %v1459_v41 = vsel %vm1449_vm11, %v1445_v30, 1326507024 }
 0x180   :  { %v1651_v55 = vpop.eup %1650  ;;  %1656 = vsinq.f32 %v1398_v34  ;;  %v2234_v56 = vmul.u32.u64.low %v1462_v13, %v1457_v50  ;;  %v2235_v62 = vmul.u32.u64.high %v1462_v13, %v1457_v50, %v2234_v56  ;;  %v1262_v61 = vadd.s32 %v2144_v58, %v2141_v49 }
 0x181   :  { %v1653_v40 = vpop.eup %1652  ;;  %vm1545_vm2 = vcmp.lt.s32.totalorder %v1544_v22, 0  ;;  %v1460_v16 = vsel %vm1448_vm13, %v1442_v7, %v1459_v41  ;;  %v1202_v17 = vxor.u32 2147483648, %v1651_v55  ;;  %vm1201_vm3 = vcmp.eq.s32.totalorder %v2173_v57, 2 }
 0x182   :  { %v1277_v2 = vsel %vm1545_vm2, 0, %v1544_v22  ;;  %v1461_v27 = vsel %vm1447_vm1, %v1458_v54, %v1460_v16  ;;  %v1199_v26 = vxor.u32 2147483648, %v1653_v40  ;;  %v1453_v23 = vsel %vm1447_vm1, %v1450_v35, %v1452_v42 }
 0x183   :  { %v1278_v36 = vsub.s32 32, %v1277_v2  ;;  %v1282_v39 = vsub.s32 4294967266, %v1277_v2  ;;  %v1203_v53 = vsel %vm1201_vm3, %v1202_v17, %v1653_v40  ;;  %v1279_v49 = vshll.u32 %v2197_v8, %v1277_v2 }
 0x184   :  { %v2248_v58 = vmul.u32.u64.low %v1462_v13, %v1461_v27  ;;  %v2249_v37 = vmul.u32.u64.high %v1462_v13, %v1461_v27, %v2248_v58  ;;  %v1200_v6 = vsel %vm1198_vm0, %v1651_v55, %v1199_v26  ;;  %v1472_v63 = vadd.s32 1, %v2235_v62 }
 0x185   :  { %v1280_v46 = vshrl.u32 %v1262_v61, %v1278_v36  ;;  %v1283_v47 = vadd.s32 127, %v1282_v39  ;;  %v1204_v51 = vsel %vm1197_vm14, %v1200_v6, %v1203_v53  ;;  %v1404_v59 = vand.u32 3, %v1403_v0 }
 0x186   :  { %v1205_v32 = vsel %vm1194_vm15, nan, %v1204_v51  ;;  %v1469_v9 = vmul.u32 %v1462_v13, %v1453_v23  ;;  %vm1471_vm4 = vc.u32 %v2249_v37, %v2234_v56  ;;  %v1292_v43 = vsub.s32 4, %v2182_v1 }
 0x187   :  { %v1281_v3 = vor.u32 %v1280_v46, %v1279_v49  ;;  %v1284_v5 = vshll.u32 %v1283_v47, 23  ;;  %1518 = vst [vmem:[#allocation7] sm:$0xff] %v1205_v32  ;;  %v1473_v19 = vsel %vm1471_vm4, %v1472_v63, %v2235_v62  ;;  %vm1409_vm5 = vcmp.eq.s32.totalorder %v1404_v59, 2 }
 0x188   :  { %v1474_v20 = vadd.s32 %v1473_v19, %v1469_v9  ;;  %vm1406_vm6 = vcmp.eq.s32.totalorder %v1404_v59, 0  ;;  %vm1405_vm7 = vcmp.lt.s32.totalorder %v1404_v59, 2  ;;  %vm1402_vm8 = vweird.f32 %v1979_v18 }
 0x189   :  { %v1655_v11 = vpop.eup %1654  ;;  %v1285_v8 = vor.u32 4788187, %v1284_v5  ;;  %v1288_v21 = vcvt.s32.f32 %v1281_v3  ;;  %vm1208_vm9 = vcmp.lt.s32.totalorder %v1983_v24, 0  ;;  %vm1207_vm10 = vcmp.le.f32.partialorder %v1206_v48, 0.7853982 }
 0x18a   :  { %v1657_v52 = vpop.eup %1656  ;;  %v1410_v7 = vxor.u32 2147483648, %v1655_v11  ;;  %v1475_v15 = vadd.s32 536870912, %v1474_v20  ;;  %v1293_v4 = vsel %vm1208_vm9, %v1292_v43, %v2182_v1  ;;  %v1470_v1 = vadd.s32 %v2234_v56, %v2249_v37 }
 0x18b   :  { %v1286_v57 = vand.u32 2147483647, %v1285_v8  ;;  %v1407_v60 = vxor.u32 2147483648, %v1657_v52  ;;  %v1295_v33 = vsel %vm1207_vm10, 0, %v1293_v4  ;;  %vm1298_vm15 = vweird.f32 %v1983_v24 }
 0x18c   :  { %v1411_v0 = vsel %vm1409_vm5, %v1410_v7, %v1657_v52  ;;  %v1476_v13 = vshrl.u32 %v1475_v15, 30  ;;  %v1299_v35 = vadd.s32 3, %v1295_v33  ;;  %vm1416_vm0 = vcmp.lt.s32.totalorder %v1985_v25, 0 }
 0x18d   :  { %v1289_v10 = vmul.f32 %v1288_v21, %v1286_v57  ;;  %v1408_v12 = vsel %vm1406_vm6, %v1655_v11, %v1407_v60  ;;  %vm1415_vm1 = vcmp.le.f32.partialorder %v1414_v38, 0.7853982  ;;  %vm1506_vm5 = vweird.f32 %v1985_v25 }
 0x18e   :  { %v1412_v44 = vsel %vm1405_vm7, %v1408_v12, %v1411_v0  ;;  %v1477_v30 = vshll.u32 %v1476_v13, 30  ;;  %v1300_v50 = vand.u32 3, %v1299_v35  ;;  %v1500_v6 = vsub.s32 4, %v1476_v13 }
 0x18f   :  { %v1290_v45 = vxor.u32 2147483648, %v1289_v10  ;;  %v1413_v28 = vsel %vm1402_vm8, nan, %v1412_v44 }
 0x190   :  { %1520 = vst [vmem:[#allocation7 + $0x10] sm:$0xff] %v1413_v28  ;;  %v1478_v29 = vsub.s32 %v1474_v20, %v1477_v30  ;;  %vm1302_vm12 = vcmp.eq.s32.totalorder %v1300_v50, 0  ;;  %vm1305_vm13 = vcmp.eq.s32.totalorder %v1300_v50, 2  ;;  %vm1301_vm14 = vcmp.lt.s32.totalorder %v1300_v50, 2 }
 0x191   :  { %v1291_v31 = vsel %vm1208_vm9, %v1290_v45, %v1289_v10  ;;  %v1501_v63 = vsel %vm1416_vm0, %v1500_v6, %v1476_v13 }
 0x192   :  { %v1294_v14 = vsel %vm1207_vm10, %v1983_v24, %v1291_v31  ;;  %v1480_v18 = vsub.s32 0, %v1478_v29  ;;  %v1503_v51 = vsel %vm1415_vm1, 0, %v1501_v63 }
 0x193   :  { %1658 = vcosq.f32 %v1294_v14  ;;  %v1507_v32 = vadd.s32 3, %v1503_v51 }
 0x194   :  { %1660 = vsinq.f32 %v1294_v14  ;;  %v1551_v34 = vmin.u32 %v1480_v18, %v1478_v29 }
 0x195   :  { %v1508_v59 = vand.u32 3, %v1507_v32 }
 0x196   :  { %v1482_v42 = vclz %v1551_v34 }
 0x197   :  { %vm1513_vm2 = vcmp.eq.s32.totalorder %v1508_v59, 2  ;;  %vm1510_vm3 = vcmp.eq.s32.totalorder %v1508_v59, 0  ;;  %vm1509_vm4 = vcmp.lt.s32.totalorder %v1508_v59, 2 }
 0x198   :  { %v1552_v22 = vadd.s32 4294967294, %v1482_v42 }
 0x19a   :  { %vm1553_vm11 = vcmp.lt.s32.totalorder %v1552_v22, 0 }
 0x19b   :  { %v1485_v55 = vsel %vm1553_vm11, 0, %v1552_v22 }
 0x19c   :  { %v1486_v62 = vsub.s32 32, %v1485_v55  ;;  %v1490_v40 = vsub.s32 4294967266, %v1485_v55  ;;  %v1487_v17 = vshll.u32 %v1478_v29, %v1485_v55 }
 0x19d   :  { %v1659_v54 = vpop.eup %1658 }
 0x19e   :  { %v1661_v41 = vpop.eup %1660  ;;  %v1306_v48 = vxor.u32 2147483648, %v1659_v54  ;;  %v1488_v2 = vshrl.u32 %v1470_v1, %v1486_v62  ;;  %v1491_v27 = vadd.s32 127, %v1490_v40 }
 0x19f   :  { %v1303_v61 = vxor.u32 2147483648, %v1661_v41 }
 0x1a0   :  { %v1307_v16 = vsel %vm1305_vm13, %v1306_v48, %v1661_v41  ;;  %v1489_v39 = vor.u32 %v1488_v2, %v1487_v17  ;;  %v1492_v23 = vshll.u32 %v1491_v27, 23 }
 0x1a1   :  { %v1304_v26 = vsel %vm1302_vm12, %v1659_v54, %v1303_v61 }
 0x1a2   :  { %v1308_v36 = vsel %vm1301_vm14, %v1304_v26, %v1307_v16  ;;  %v1493_v49 = vor.u32 4788187, %v1492_v23  ;;  %v1496_v58 = vcvt.s32.f32 %v1489_v39 }
 0x1a3   :  { %v1309_v53 = vsel %vm1298_vm15, nan, %v1308_v36 }
 0x1a4   :  { %1519 = vst [vmem:[#allocation7 + $0x8] sm:$0xff] %v1309_v53  ;;  %v1494_v56 = vand.u32 2147483647, %v1493_v49 }
 0x1a6   :  { %v1497_v37 = vmul.f32 %v1496_v58, %v1494_v56 }
 0x1a8   :  { %v1498_v46 = vxor.u32 2147483648, %v1497_v37 }
 0x1aa   :  { %v1499_v47 = vsel %vm1416_vm0, %v1498_v46, %v1497_v37 }
 0x1ab   :  { %v1502_v24 = vsel %vm1415_vm1, %v1985_v25, %v1499_v47 }
 0x1ac   :  { %1662 = vcosq.f32 %v1502_v24 }
 0x1ad   :  { %1664 = vsinq.f32 %v1502_v24 }
 0x1b6   :  { %v1663_v3 = vpop.eup %1662 }
 0x1b7   :  { %v1665_v5 = vpop.eup %1664  ;;  %v1514_v9 = vxor.u32 2147483648, %v1663_v3 }
 0x1b8   :  { %v1511_v11 = vxor.u32 2147483648, %v1665_v5 }
 0x1b9   :  { %v1515_v8 = vsel %vm1513_vm2, %v1514_v9, %v1665_v5 }
 0x1ba   :  { %v1512_v38 = vsel %vm1510_vm3, %v1663_v3, %v1511_v11 }
 0x1bb   :  { %v1516_v19 = vsel %vm1509_vm4, %v1512_v38, %v1515_v8 }
 0x1bc   :  { %v1517_v52 = vsel %vm1506_vm5, nan, %v1516_v19 }
 0x1bd   :  { %1521 = vst [vmem:[#allocation7 + $0x18] sm:$0xff] %v1517_v52 }
 0x1be   :  { %1721 = shalt.err (!%p1718_p6)
}
 0x1bf   :  { %s1722_s10 = scalar_lea.hbm %s2290_s2, 512 }
 0x1c0   :  { %p1723_p7 = scmp.ne.s32.totalorder %s2290_s2, %s1722_s10  ;;  %p1726_p8 = scmp.lt.u32.totalorder %s1722_s10, %s2290_s2 }
 0x1c2   :  { %p1728_p9 = pnand %p1726_p8, %p1723_p7 }
 0x1c4   :  { %1731 = shalt.err (!%p1728_p9)
}
 0x1c5   :  { %1531 = dma.vmem_to_hbm [thread:$0]  %s1529_s6, 512, %s2290_s2, [#allocation4]  }
 0x1c6   :  { %1736 = dma.done.wait [#allocation4], 512  }
 0x1c7   :  { %1737 = vsyncadd [#allocation4], 4294966784 }
 0x1c8   :  { %1535 = vsyncpa [#allocation3], 1 }
 0x1c9   :  { %1536 = vsyncpa [#allocation6], 1 }
 0x1ca   :  { %1537 = vsyncpa [#allocation4], 1 }

</bundles_post_ra>
